<compile_context>
chip_gen: v7x
topology: tpu7x:2x2x1
jax: 0.10.0
libtpu: 0.0.40
codegen_flags: <defaults>
</compile_context>

<pallas_src>
import functools

import jax
import jax.numpy as jnp
from jax.experimental import pallas as pl
from jax.experimental.pallas import tpu as pltpu

# Module hyper-parameters (small, consistent with the forward pass).
SEQ_LEN = 8      # sequence_length
X_DIM = 4        # x_dimension
Z_DIM = 1        # z_dimension (module asserts z_dimension == 1)
INTER_DIM = 32   # inter_dim
N_LAYERS = 3     # n_layers

D_IN = SEQ_LEN * Z_DIM    # 8   (MLP input dim)
D_OUT = SEQ_LEN * X_DIM   # 32  (MLP output dim)

MAX_TILE_P = 4096                  # packed rows per grid step
PALLAS_MIN_BATCH = 256             # below this, plain XLA fusion wins
VMEM_LIMIT_BYTES = 32 * 1024 * 1024  # safe on v5e/v6e/v7x at these tile sizes


def _round_up(n, m):
    return ((n + m - 1) // m) * m


def _default_pack():
    """Lane-packing factor from MXU width: 256-wide (v6e/v7x) -> 8, 128-wide -> 4."""
    try:
        kind = jax.devices()[0].device_kind.lower()
    except Exception:
        return 8
    if any(tag in kind for tag in ("v2", "v3", "v4", "v5")):
        return 4
    return 8


# ----------------------------------------------------------------------------
# Kernel: fused 3-layer MLP on a lane-packed batch tile.
# bf16 MXU operands, f32 accumulation + f32 bias/ReLU (VPU-safe on v5e).
# ----------------------------------------------------------------------------
@functools.lru_cache(maxsize=None)
def _make_kernel(h_wide, out_wide):
    def kernel(z_ref, w1_ref, w2_ref, w3_ref, b_ref, o_ref):
        x = z_ref[...].astype(jnp.bfloat16)             # (tile_p, IN_WIDE)
        b = b_ref[...]                                  # (3, 1, B_WIDE) f32
        h = jnp.dot(x, w1_ref[...], preferred_element_type=jnp.float32)
        h = jnp.maximum(h + b[0, :, :h_wide], 0.0)
        h = jnp.dot(h.astype(jnp.bfloat16), w2_ref[...],
                    preferred_element_type=jnp.float32)
        h = jnp.maximum(h + b[1, :, :h_wide], 0.0)
        y = jnp.dot(h.astype(jnp.bfloat16), w3_ref[...],
                    preferred_element_type=jnp.float32)
        o_ref[...] = (y + b[2, :, :out_wide]).astype(o_ref.dtype)
    return kernel


# ----------------------------------------------------------------------------
# Parameter handling.
# ----------------------------------------------------------------------------
def init_decoder_mean_params(key):
    """Deterministic PyTorch-Linear-style init (uniform +/- 1/sqrt(fan_in))."""
    dims = [D_IN, INTER_DIM, INTER_DIM, D_OUT]
    params = []
    for i in range(N_LAYERS):
        key, kw, kb = jax.random.split(key, 3)
        bound = 1.0 / (dims[i] ** 0.5)
        w = jax.random.uniform(kw, (dims[i], dims[i + 1]), jnp.float32,
                               minval=-bound, maxval=bound)
        b = jax.random.uniform(kb, (1, dims[i + 1]), jnp.float32,
                               minval=-bound, maxval=bound)
        params.append((w, b))
    return params


def prepare_decoder_mean_params(params, pack):
    """One-time prep: block-diag-widen weights (x pack, bf16) and stack biases.

    Hoisted out of the forward path so no block_diag / tile / scatter XLA ops
    (nor the extra HBM round-trip of the widened weights) run per call.
    """
    (w1, b1), (w2, b2), (w3, b3) = params
    bd = jax.scipy.linalg.block_diag
    w1w = bd(*([w1] * pack)).astype(jnp.bfloat16)      # (pack*D_IN,  pack*INTER)
    w2w = bd(*([w2] * pack)).astype(jnp.bfloat16)      # (pack*INTER, pack*INTER)
    w3w = bd(*([w3] * pack)).astype(jnp.bfloat16)      # (pack*INTER, pack*D_OUT)
    h_wide = pack * INTER_DIM
    out_wide = pack * D_OUT
    b_wide = max(h_wide, out_wide)
    b_all = jnp.zeros((N_LAYERS, 1, b_wide), jnp.float32)
    b_all = b_all.at[0, :, :h_wide].set(jnp.tile(b1.reshape(1, -1), (1, pack)))
    b_all = b_all.at[1, :, :h_wide].set(jnp.tile(b2.reshape(1, -1), (1, pack)))
    b_all = b_all.at[2, :, :out_wide].set(jnp.tile(b3.reshape(1, -1), (1, pack)))
    return {"raw": params, "pack": int(pack),
            "w1w": w1w, "w2w": w2w, "w3w": w3w, "b_all": b_all}


# ----------------------------------------------------------------------------
# Pallas / JAX MLP bodies on the flattened (B, S*z_dim) input.
# ----------------------------------------------------------------------------
def _pallas_mlp(z_flat, prepared, max_tile_p):
    pack = prepared["pack"]
    in_wide = pack * D_IN
    h_wide = pack * INTER_DIM
    out_wide = pack * D_OUT
    b_wide = prepared["b_all"].shape[-1]

    batch = z_flat.shape[0]
    # Pad only to a multiple of PACK (<= pack-1 rows) so the lane-packing
    # reshape is exact; no pad-to-full-tile copies.
    b_pack = _round_up(batch, pack)
    if b_pack != batch:
        z_flat = jnp.pad(z_flat, ((0, b_pack - batch), (0, 0)))
    p = b_pack // pack
    z_packed = z_flat.reshape(p, in_wide)              # free row-major reshape

    # Tile the packed-batch axis.  Target >= 2 grid steps (v7x: 2 TensorCores,
    # "parallel" axis shards them), keep a 16-sublane multiple, cap at
    # max_tile_p; for tiny batches use a single full-extent block.
    tile_p = min(max_tile_p, max(16, _round_up(pl.cdiv(p, 2), 16)))
    if tile_p >= p:
        tile_p = p
    grid = (pl.cdiv(p, tile_p),)                       # partial last block OK

    out_packed = pl.pallas_call(
        _make_kernel(h_wide, out_wide),
        out_shape=jax.ShapeDtypeStruct((p, out_wide), jnp.float32),
        grid=grid,
        in_specs=[
            pl.BlockSpec((tile_p, in_wide), lambda i: (i, 0)),        # z tile
            pl.BlockSpec((in_wide, h_wide), lambda i: (0, 0)),        # W1 (resident)
            pl.BlockSpec((h_wide, h_wide), lambda i: (0, 0)),         # W2 (resident)
            pl.BlockSpec((h_wide, out_wide), lambda i: (0, 0)),       # W3 (resident)
            pl.BlockSpec((N_LAYERS, 1, b_wide), lambda i: (0, 0, 0)), # biases
        ],
        out_specs=pl.BlockSpec((tile_p, out_wide), lambda i: (i, 0)),
        compiler_params=pltpu.CompilerParams(
            dimension_semantics=("parallel",),
            vmem_limit_bytes=VMEM_LIMIT_BYTES),
    )(z_packed, prepared["w1w"], prepared["w2w"], prepared["w3w"],
      prepared["b_all"])

    # Unpack lanes back to (B, D_OUT); drop the <= pack-1 padded rows.
    out_flat = out_packed.reshape(b_pack, D_OUT)
    if b_pack != batch:
        out_flat = out_flat[:batch]
    return out_flat


def _jax_mlp(z_flat, params):
    (w1, b1), (w2, b2), (w3, b3) = params
    h = jnp.maximum(z_flat @ w1 + b1, 0.0)
    h = jnp.maximum(h @ w2 + b2, 0.0)
    return h @ w3 + b3


# ----------------------------------------------------------------------------
# Public forward.
# ----------------------------------------------------------------------------
def decoder_mean_forward(z, prepared, use_pallas=None, max_tile_p=MAX_TILE_P):
    """Forward of DecoderMean. Accepts z of rank 1, 2 or 3."""
    orig_ndim = z.ndim
    if z.ndim == 1:          # (z_dim,)   -> (1, 1, z_dim)
        z = z[None, None, :]
    elif z.ndim == 2:        # (S, z_dim) -> (1, S, z_dim)
        z = z[None, :, :]
    elif z.ndim != 3:
        raise ValueError("Input tensor z must have 1, 2, or 3 dimensions.")

    batch, seq, zdim = z.shape
    if zdim != Z_DIM:
        raise ValueError(f"Incorrect latent dim: expected z_dim={Z_DIM}, got {zdim}.")
    if seq * zdim != D_IN:
        # Mirrors the PyTorch reference: the MLP's first Linear requires
        # in_features == sequence_length * z_dimension, so rank-1 inputs only
        # work when sequence_length == 1.
        raise ValueError(
            f"Flattened input dim {seq * zdim} != MLP input dim {D_IN} "
            f"(sequence_length={SEQ_LEN}); rank-1 inputs are only valid when "
            f"sequence_length == 1, exactly as in the PyTorch reference.")

    z_flat = z.reshape(batch, D_IN).astype(jnp.float32)

    if use_pallas is None:
        use_pallas = batch >= PALLAS_MIN_BATCH   # tiny batches: plain XLA wins
    if use_pallas:
        mu_flat = _pallas_mlp(z_flat, prepared, max_tile_p)
    else:
        mu_flat = _jax_mlp(z_flat, prepared["raw"])

    # TODO(synk): the reference calls `sm.shape_out(mu_x)` with `sm` undefined
    # in the source; we apply the natural reshape back to (B, S, x_dim).
    mu_x = mu_flat.reshape(batch, SEQ_LEN, X_DIM)
    if orig_ndim == 1:
        mu_x = mu_x[0, 0]
    elif orig_ndim == 2:
        mu_x = mu_x[0]
    return mu_x


def _reference_forward(z, params):
    """Pure-JAX f32 reference of the same MLP (correctness check). z is rank-3."""
    batch = z.shape[0]
    z_flat = z.reshape(batch, -1).astype(jnp.float32)
    return _jax_mlp(z_flat, params).reshape(batch, SEQ_LEN, X_DIM)


if __name__ == "__main__":
    key = jax.random.PRNGKey(0)
    key_p, key_z, key_z2, key_z3 = jax.random.split(key, 4)

    raw_params = init_decoder_mean_params(key_p)
    pack = _default_pack()
    prepared = prepare_decoder_mean_params(raw_params, pack)

    # bf16 MXU operands => compare against the f32 reference with a tolerance
    # comfortably above bf16 rounding (~1e-2) but far below any layout bug.
    ATOL, RTOL = 2e-2, 2e-2

    # --- small batch (B=2), forced through the Pallas kernel ---
    z_small = jax.random.normal(key_z, (2, SEQ_LEN, Z_DIM), dtype=jnp.float32)
    mu_pallas = jax.block_until_ready(
        decoder_mean_forward(z_small, prepared, use_pallas=True))
    assert mu_pallas.shape == (2, SEQ_LEN, X_DIM), mu_pallas.shape
    ref_small = _reference_forward(z_small, raw_params)
    assert jnp.allclose(mu_pallas, ref_small, atol=ATOL, rtol=RTOL), \
        "Pallas mismatch vs JAX reference (small batch)"

    # --- same batch through the default dispatcher (pure-XLA fast path) ---
    mu_xla = jax.block_until_ready(decoder_mean_forward(z_small, prepared))
    assert jnp.allclose(mu_xla, ref_small, atol=ATOL, rtol=RTOL), \
        "XLA fast-path mismatch vs JAX reference"

    # --- non-multiple-of-pack batch: multi-step grid + partial trailing block ---
    z_med = jax.random.normal(key_z2, (300, SEQ_LEN, Z_DIM), dtype=jnp.float32)
    mu_med = jax.block_until_ready(
        decoder_mean_forward(z_med, prepared, use_pallas=True, max_tile_p=32))
    assert mu_med.shape == (300, SEQ_LEN, X_DIM), mu_med.shape
    ref_med = _reference_forward(z_med, raw_params)
    assert jnp.allclose(mu_med, ref_med, atol=ATOL, rtol=RTOL), \
        "Pallas mismatch vs JAX reference (tiled / partial-block batch)"

    # --- exercise the other PACK width too (both code paths covered) ---
    alt_pack = 4 if pack == 8 else 8
    prepared_alt = prepare_decoder_mean_params(raw_params, alt_pack)
    mu_alt = jax.block_until_ready(
        decoder_mean_forward(z_med, prepared_alt, use_pallas=True))
    assert jnp.allclose(mu_alt, ref_med, atol=ATOL, rtol=RTOL), \
        f"Pallas mismatch vs JAX reference (pack={alt_pack})"

    # --- rank-2 input (S, z_dim), output (S, x_dim) ---
    z_seq = jax.random.normal(key_z3, (SEQ_LEN, Z_DIM), dtype=jnp.float32)
    mu_seq = jax.block_until_ready(
        decoder_mean_forward(z_seq, prepared, use_pallas=True))
    assert mu_seq.shape == (SEQ_LEN, X_DIM), mu_seq.shape
    ref_seq = _reference_forward(z_seq[None], raw_params)[0]
    assert jnp.allclose(mu_seq, ref_seq, atol=ATOL, rtol=RTOL), \
        "Pallas mismatch vs JAX reference (rank-2 input)"

    print("KERNEL_OK")
</pallas_src>

<mosaic_0001>
module attributes {stable_mosaic.version = 11 : i64} {
  func.func @kernel(%arg0: i32, %arg1: memref<1x64xf32, #tpu.memory_space<vmem>>, %arg2: memref<64x256xbf16, #tpu.memory_space<vmem>>, %arg3: memref<256x256xbf16, #tpu.memory_space<vmem>>, %arg4: memref<256x256xbf16, #tpu.memory_space<vmem>>, %arg5: memref<3x1x256xf32, #tpu.memory_space<vmem>>, %arg6: memref<1x256xf32, #tpu.memory_space<vmem>>) attributes {dimension_semantics = [#tpu.dimension_semantics<parallel>], iteration_bounds = array<i64: 1>, scalar_prefetch = 0 : i64, scratch_operands = 0 : i64, tpu.core_type = #tpu.core_type<tc>, window_params = [{transform_indices = @transform_0, window_bounds = array<i64: 1, 64>}, {pipeline_mode = #tpu.pipeline_mode<synchronous>, transform_indices = @transform_1, window_bounds = array<i64: 64, 256>}, {pipeline_mode = #tpu.pipeline_mode<synchronous>, transform_indices = @transform_2, window_bounds = array<i64: 256, 256>}, {pipeline_mode = #tpu.pipeline_mode<synchronous>, transform_indices = @transform_3, window_bounds = array<i64: 256, 256>}, {pipeline_mode = #tpu.pipeline_mode<synchronous>, transform_indices = @transform_4, window_bounds = array<i64: 3, 1, 256>}, {transform_indices = @transform_5, window_bounds = array<i64: 1, 256>}]} {
    %c0 = arith.constant 0 : index
    %c0_0 = arith.constant 0 : index
    %0 = vector.load %arg1[%c0, %c0_0] : memref<1x64xf32, #tpu.memory_space<vmem>>, vector<1x64xf32>
    %1 = arith.truncf %0 : vector<1x64xf32> to vector<1x64xbf16>
    %c0_1 = arith.constant 0 : index
    %c0_2 = arith.constant 0 : index
    %c0_3 = arith.constant 0 : index
    %2 = vector.load %arg5[%c0_1, %c0_2, %c0_3] : memref<3x1x256xf32, #tpu.memory_space<vmem>>, vector<3x1x256xf32>
    %c0_4 = arith.constant 0 : index
    %c0_5 = arith.constant 0 : index
    %3 = vector.load %arg2[%c0_4, %c0_5] : memref<64x256xbf16, #tpu.memory_space<vmem>>, vector<64x256xbf16>
    %cst = arith.constant dense<0.000000e+00> : vector<1x256xf32>
    %4 = tpu.matmul %1, %3, %cst {dimension_numbers = #tpu.dot_dimension_numbers<[1], [0], [0], [1], [0, 0, 1, 1], [], []>} : vector<1x64xbf16>, vector<64x256xbf16>, vector<1x256xf32> -> vector<1x256xf32>
    %5 = vector.extract_strided_slice %2 {offsets = [0, 0, 0], sizes = [1, 1, 256], strides = [1, 1, 1]} : vector<3x1x256xf32> to vector<1x1x256xf32>
    %6 = vector.shape_cast %5 : vector<1x1x256xf32> to vector<1x256xf32>
    %7 = arith.addf %4, %6 : vector<1x256xf32>
    %cst_6 = arith.constant 0.000000e+00 : f32
    %8 = vector.broadcast %cst_6 : f32 to vector<1x256xf32>
    %9 = arith.maximumf %7, %8 : vector<1x256xf32>
    %10 = arith.truncf %9 : vector<1x256xf32> to vector<1x256xbf16>
    %c0_7 = arith.constant 0 : index
    %c0_8 = arith.constant 0 : index
    %11 = vector.load %arg3[%c0_7, %c0_8] : memref<256x256xbf16, #tpu.memory_space<vmem>>, vector<256x256xbf16>
    %cst_9 = arith.constant dense<0.000000e+00> : vector<1x256xf32>
    %12 = tpu.matmul %10, %11, %cst_9 {dimension_numbers = #tpu.dot_dimension_numbers<[1], [0], [0], [1], [0, 0, 1, 1], [], []>} : vector<1x256xbf16>, vector<256x256xbf16>, vector<1x256xf32> -> vector<1x256xf32>
    %13 = vector.extract_strided_slice %2 {offsets = [1, 0, 0], sizes = [1, 1, 256], strides = [1, 1, 1]} : vector<3x1x256xf32> to vector<1x1x256xf32>
    %14 = vector.shape_cast %13 : vector<1x1x256xf32> to vector<1x256xf32>
    %15 = arith.addf %12, %14 : vector<1x256xf32>
    %cst_10 = arith.constant 0.000000e+00 : f32
    %16 = vector.broadcast %cst_10 : f32 to vector<1x256xf32>
    %17 = arith.maximumf %15, %16 : vector<1x256xf32>
    %18 = arith.truncf %17 : vector<1x256xf32> to vector<1x256xbf16>
    %c0_11 = arith.constant 0 : index
    %c0_12 = arith.constant 0 : index
    %19 = vector.load %arg4[%c0_11, %c0_12] : memref<256x256xbf16, #tpu.memory_space<vmem>>, vector<256x256xbf16>
    %cst_13 = arith.constant dense<0.000000e+00> : vector<1x256xf32>
    %20 = tpu.matmul %18, %19, %cst_13 {dimension_numbers = #tpu.dot_dimension_numbers<[1], [0], [0], [1], [0, 0, 1, 1], [], []>} : vector<1x256xbf16>, vector<256x256xbf16>, vector<1x256xf32> -> vector<1x256xf32>
    %21 = vector.extract_strided_slice %2 {offsets = [2, 0, 0], sizes = [1, 1, 256], strides = [1, 1, 1]} : vector<3x1x256xf32> to vector<1x1x256xf32>
    %22 = vector.shape_cast %21 : vector<1x1x256xf32> to vector<1x256xf32>
    %23 = arith.addf %20, %22 : vector<1x256xf32>
    %c0_14 = arith.constant 0 : index
    %c0_15 = arith.constant 0 : index
    %24 = vector.load %arg6[%c0_14, %c0_15] : memref<1x256xf32, #tpu.memory_space<vmem>>, vector<1x256xf32>
    tpu.vector_store %arg6[%c0_14, %c0_15], %23 {strides = array<i32>} : memref<1x256xf32, #tpu.memory_space<vmem>>, vector<1x256xf32>,
    return
  }
  func.func @transform_0(%arg0: i32) -> (i32, i32) {
    %c0_i32 = arith.constant 0 : i32
    %c0_i32_0 = arith.constant 0 : i32
    return %arg0, %c0_i32 : i32, i32
  }
  func.func @transform_1(%arg0: i32) -> (i32, i32) {
    %c0_i32 = arith.constant 0 : i32
    %c0_i32_0 = arith.constant 0 : i32
    %c0_i32_1 = arith.constant 0 : i32
    return %c0_i32, %c0_i32_0 : i32, i32
  }
  func.func @transform_2(%arg0: i32) -> (i32, i32) {
    %c0_i32 = arith.constant 0 : i32
    %c0_i32_0 = arith.constant 0 : i32
    %c0_i32_1 = arith.constant 0 : i32
    return %c0_i32, %c0_i32_0 : i32, i32
  }
  func.func @transform_3(%arg0: i32) -> (i32, i32) {
    %c0_i32 = arith.constant 0 : i32
    %c0_i32_0 = arith.constant 0 : i32
    %c0_i32_1 = arith.constant 0 : i32
    return %c0_i32, %c0_i32_0 : i32, i32
  }
  func.func @transform_4(%arg0: i32) -> (i32, i32, i32) {
    %c0_i32 = arith.constant 0 : i32
    %c0_i32_0 = arith.constant 0 : i32
    %c0_i32_1 = arith.constant 0 : i32
    %c0_i32_2 = arith.constant 0 : i32
    return %c0_i32, %c0_i32_0, %c0_i32_1 : i32, i32, i32
  }
  func.func @transform_5(%arg0: i32) -> (i32, i32) {
    %c0_i32 = arith.constant 0 : i32
    %c0_i32_0 = arith.constant 0 : i32
    return %arg0, %c0_i32 : i32, i32
  }
}

</mosaic_0001>

<bundles_post_ra>
// kernel: tpu_custom_call.1
= control target key start
LH: loop header
LB: loop body
LE: loop exit
PB: predicated region body
PF: predicated region fallthrough
CT: control target
= control target key end

     0   :  { %10 = vsyncpa [#allocation3], 0  ;;  %s1145_s0 = inlined_call_operand.hbm [shape: f32[1,64], index: 0, kind: input, shape index: {}]   ;;  %s1146_s1 = inlined_call_operand.hbm [shape: bf16[64,256], index: 1, kind: input, shape index: {}]   ;;  %s1147_s2 = inlined_call_operand.hbm [shape: bf16[256,256], index: 2, kind: input, shape index: {}]   ;;  %s1148_s3 = inlined_call_operand.hbm [shape: bf16[256,256], index: 3, kind: input, shape index: {}]   ;;  %s1149_s4 = inlined_call_operand.vmem [shape: f32[3,1,256], index: 4, kind: input, shape index: {}]   ;;  %s1150_s5 = inlined_call_operand.hbm [shape: f32[1,256], index: 5, kind: output, shape index: {}]  }
   0x1   :  { %11 = vsyncpa [#allocation6], 0 }
   0x2   :  { %12 = vsyncpa [#allocation9], 0 }
   0x3   :  { %13 = vsyncpa [#allocation4], 0  ;;  %s1028_s18 = smov [#allocation5]   ;;  %s910_s22 = scalar_lea.hbm %s1146_s1, 1024 }
   0x4   :  { %s29_s19 = sshll.u32 %s1028_s18, 4  ;;  %p911_p0 = scmp.ne.s32.totalorder %s1146_s1, %s910_s22  ;;  %s30_s19 = int_to_ptr.vmem [resolvable:$true] %s29_s19 }
   0x5   :  { %p914_p1 = scmp.lt.u32.totalorder %s910_s22, %s1146_s1 }
   0x7   :  { %p916_p2 = pnand %p914_p1, %p911_p0 }
   0x9   :  { %919 = shalt.err (!%p916_p2)
}
   0xa   :  { %s920_s27 = scalar_lea.vmem %s30_s19, 1024  ;;  %p925_p4 = scmp.lt.s32.totalorder %s30_s19, %s30_s19 }
   0xb   :  { %p921_p3 = scmp.ne.s32.totalorder %s30_s19, %s920_s27  ;;  %p926_p5 = scmp.lt.s32.totalorder %s920_s27, %s920_s27 }
   0xd   :  { %p927_p6 = por %p926_p5, %p925_p4 }
   0xf   :  { %p928_p7 = pnand %p927_p6, %p921_p3 }
  0x11   :  { %931 = shalt.err (!%p928_p7)
}
  0x12   :  { %s1029_s28 = smov 128   ;;  %s1030_s29 = smov 8  }
  0x13   :  { %35 = dma.hbm_to_vmem [thread:$0]  %s1146_s1, 1024, %s30_s19, [#allocation6], %s1029_s28, %s1029_s28, %s1030_s29  }
  0x14   :  { %s1031_s7 = smov [#allocation2]   ;;  %s1032_s9 = smov [#allocation7]  }
  0x15   :  { %s20_s8 = sshll.u32 %s1031_s7, 4  ;;  %s41_s10 = sshll.u32 %s1032_s9, 4  ;;  %s21_s8 = int_to_ptr.vmem [resolvable:$true] %s20_s8  ;;  %s42_s10 = int_to_ptr.vmem [resolvable:$true] %s41_s10 }
  0x16   :  { %s932_s13 = scalar_lea.hbm %s1145_s0, 16 }
  0x17   :  { %p933_p8 = scmp.ne.s32.totalorder %s1145_s0, %s932_s13  ;;  %p936_p9 = scmp.lt.u32.totalorder %s932_s13, %s1145_s0 }
  0x19   :  { %p938_p10 = pnand %p936_p9, %p933_p8 }
  0x1b   :  { %941 = shalt.err (!%p938_p10)
}
  0x1c   :  { %s942_s1 = scalar_lea.vmem %s21_s8, 16  ;;  %s946_s18 = scalar_lea.vmem %s21_s8, 32 }
  0x1d   :  { %p943_p11 = scmp.ne.s32.totalorder %s21_s8, %s942_s1  ;;  %p947_p12 = scmp.lt.s32.totalorder %s21_s8, %s21_s8 }
  0x1e   :  { %p948_p13 = scmp.lt.s32.totalorder %s946_s18, %s942_s1 }
  0x20   :  { %p949_p0 = por %p948_p13, %p947_p12 }
  0x22   :  { %p950_p1 = pnand %p949_p0, %p943_p11 }
  0x24   :  { %953 = shalt.err (!%p950_p1)
}
  0x25   :  { %23 = dma.hbm_to_vmem [thread:$0]  %s1145_s0, 16, %s21_s8, [#allocation3]  }
  0x26   :  { %s954_s23 = scalar_lea.hbm %s1147_s2, 4096 }
  0x27   :  { %p955_p2 = scmp.ne.s32.totalorder %s1147_s2, %s954_s23  ;;  %p958_p3 = scmp.lt.u32.totalorder %s954_s23, %s1147_s2 }
  0x29   :  { %p960_p4 = pnand %p958_p3, %p955_p2 }
  0x2b   :  { %963 = shalt.err (!%p960_p4)
}
  0x2c   :  { %s964_s30 = scalar_lea.vmem %s42_s10, 4096  ;;  %p969_p6 = scmp.lt.s32.totalorder %s42_s10, %s42_s10 }
  0x2d   :  { %p965_p5 = scmp.ne.s32.totalorder %s42_s10, %s964_s30  ;;  %p970_p7 = scmp.lt.s32.totalorder %s964_s30, %s964_s30 }
  0x2f   :  { %p971_p8 = por %p970_p7, %p969_p6 }
  0x31   :  { %p972_p9 = pnand %p971_p8, %p965_p5 }
  0x33   :  { %975 = shalt.err (!%p972_p9)
}
  0x34   :  { %47 = dma.hbm_to_vmem [thread:$0]  %s1147_s2, 4096, %s42_s10, [#allocation6], %s1029_s28, %s1029_s28, %s1030_s29  }
  0x35   :  { %s1033_s7 = smov [#allocation8]   ;;  %s976_s12 = scalar_lea.hbm %s1148_s3, 4096 }
  0x36   :  { %s53_s8 = sshll.u32 %s1033_s7, 4  ;;  %p977_p10 = scmp.ne.s32.totalorder %s1148_s3, %s976_s12  ;;  %s54_s8 = int_to_ptr.vmem [resolvable:$true] %s53_s8 }
  0x37   :  { %p980_p11 = scmp.lt.u32.totalorder %s976_s12, %s1148_s3 }
  0x39   :  { %p982_p12 = pnand %p980_p11, %p977_p10 }
  0x3b   :  { %985 = shalt.err (!%p982_p12)
}
  0x3c   :  { %s986_s17 = scalar_lea.vmem %s54_s8, 4096  ;;  %p991_p0 = scmp.lt.s32.totalorder %s54_s8, %s54_s8 }
  0x3d   :  { %p987_p13 = scmp.ne.s32.totalorder %s54_s8, %s986_s17  ;;  %p992_p1 = scmp.lt.s32.totalorder %s986_s17, %s986_s17 }
  0x3f   :  { %p993_p2 = por %p992_p1, %p991_p0 }
  0x41   :  { %p994_p3 = pnand %p993_p2, %p987_p13 }
  0x43   :  { %997 = shalt.err (!%p994_p3)
}
  0x44   :  { %59 = dma.hbm_to_vmem [thread:$0]  %s1148_s3, 4096, %s54_s8, [#allocation9], %s1029_s28, %s1029_s28, %s1030_s29  }
  0x45   :  { %1020 = dma.done.wait [#allocation3], 16  }
  0x46   :  { %1021 = vsyncadd [#allocation3], 4294967280 }
  0x47   :  { %1022 = dma.done.wait [#allocation6], 5120  }
  0x48   :  { %1023 = vsyncadd [#allocation6], 4294962176 }
  0x49   :  { %1024 = dma.done.wait [#allocation9], 4096  }
  0x4a   :  { %1025 = vsyncadd [#allocation9], 4294963200  ;;  %v1034_v0 = vmov 0   ;;  %v802_v1 = vld [vmem:[#allocation5 + $0x4] ss:$8 sps:$4 sm:$0xff]   ;;  %vm139_vm0 = vcmask 523264  }
  0x4b   :  { %175 = vmatprep.mubr.bf16.mxu0 %v1034_v0  ;;  %v804_v2 = vld [vmem:[#allocation5] ss:$8 sps:$4 sm:$0xff]   ;;  %143 = vmatprep.subr.bf16.mxu0 %v802_v1  ;;  %v805_v3 = vld [vmem:[#allocation5 + $0x14] ss:$8 sps:$4 sm:$0xff]   ;;  %v807_v4 = vld [vmem:[#allocation5 + $0x10] ss:$8 sps:$4 sm:$0xff]  }
  0x4c   :  { %144 = vmatpush1.bf16.msra.mxu0 %v804_v2  ;;  %v808_v5 = vld [vmem:[#allocation5 + $0x24] ss:$8 sps:$4 sm:$0xff]   ;;  %v810_v6 = vld [vmem:[#allocation5 + $0x20] ss:$8 sps:$4 sm:$0xff]   ;;  %v817_v9 = vld [vmem:[#allocation7 + $0x14] ss:$8 sps:$4 sm:$0xff]  }
  0x4d   :  { %145 = vmatprep.subr.bf16.mxu0 %v805_v3  ;;  %v814_v7 = vld [vmem:[#allocation7 + $0x4] ss:$8 sps:$4 sm:$0xff]   ;;  %v816_v8 = vld [vmem:[#allocation7] ss:$8 sps:$4 sm:$0xff]   ;;  %v811_v10 = vld [vmem:[#allocation5 + $0x34] ss:$8 sps:$4 sm:$0xff]  }
  0x4e   :  { %391 = vmatprep.subr.bf16.mxu1 %v814_v7  ;;  %v819_v11 = vld [vmem:[#allocation7 + $0x10] ss:$8 sps:$4 sm:$0xff]   ;;  %v820_v13 = vld [vmem:[#allocation7 + $0x24] ss:$8 sps:$4 sm:$0xff]   ;;  %v75_v14 = vld [vmem:[#allocation2] sm:$0x1]  ;;  %v129_v7 = vlaneseq }
  0x4f   :  { %392 = vmatpush1.bf16.msra.mxu1 %v816_v8  ;;  %v813_v12 = vld [vmem:[#allocation5 + $0x30] ss:$8 sps:$4 sm:$0xff]   ;;  %v822_v15 = vld [vmem:[#allocation7 + $0x20] ss:$8 sps:$4 sm:$0xff]   ;;  %v76_v16 = vpack.c.bf16 %v75_v14, %v75_v14  ;;  %v823_v17 = vld [vmem:[#allocation7 + $0x34] ss:$8 sps:$4 sm:$0xff]  }
  0x50   :  { %146 = vmatpush1.bf16.msra.mxu0 %v807_v4  ;;  %393 = vmatprep.subr.bf16.mxu1 %v817_v9  ;;  %v825_v18 = vld [vmem:[#allocation7 + $0x30] ss:$8 sps:$4 sm:$0xff]   ;;  %v826_v19 = vld [vmem:[#allocation7 + $0x44] ss:$8 sps:$4 sm:$0xff]   ;;  %v828_v20 = vld [vmem:[#allocation7 + $0x40] ss:$8 sps:$4 sm:$0xff]  }
  0x51   :  { %147 = vmatprep.subr.bf16.mxu0 %v808_v5  ;;  %v829_v21 = vld [vmem:[#allocation7 + $0x54] ss:$8 sps:$4 sm:$0xff]   ;;  %v831_v22 = vld [vmem:[#allocation7 + $0x50] ss:$8 sps:$4 sm:$0xff]   ;;  %v832_v23 = vld [vmem:[#allocation7 + $0x64] ss:$8 sps:$4 sm:$0xff]  }
  0x52   :  { %v834_v24 = vld [vmem:[#allocation7 + $0x60] ss:$8 sps:$4 sm:$0xff]   ;;  %v835_v25 = vld [vmem:[#allocation7 + $0x74] ss:$8 sps:$4 sm:$0xff]   ;;  %v837_v26 = vld [vmem:[#allocation7 + $0x70] ss:$8 sps:$4 sm:$0xff]  }
  0x53   :  { %394 = vmatpush1.bf16.msra.mxu1 %v819_v11  ;;  %v838_v27 = vld [vmem:[#allocation7 + $0x84] ss:$8 sps:$4 sm:$0xff]   ;;  %v840_v28 = vld [vmem:[#allocation7 + $0x80] ss:$8 sps:$4 sm:$0xff]   ;;  %v841_v29 = vld [vmem:[#allocation7 + $0x94] ss:$8 sps:$4 sm:$0xff]  }
  0x54   :  { %148 = vmatpush1.bf16.msra.mxu0 %v810_v6  ;;  %395 = vmatprep.subr.bf16.mxu1 %v820_v13  ;;  %v843_v30 = vld [vmem:[#allocation7 + $0x90] ss:$8 sps:$4 sm:$0xff]   ;;  %v844_v31 = vld [vmem:[#allocation7 + $0xa4] ss:$8 sps:$4 sm:$0xff]   ;;  %v846_v32 = vld [vmem:[#allocation7 + $0xa0] ss:$8 sps:$4 sm:$0xff]  }
  0x55   :  { %149 = vmatprep.subr.bf16.mxu0 %v811_v10  ;;  %v847_v33 = vld [vmem:[#allocation7 + $0xb4] ss:$8 sps:$4 sm:$0xff]   ;;  %v849_v34 = vld [vmem:[#allocation7 + $0xb0] ss:$8 sps:$4 sm:$0xff]   ;;  %v850_v35 = vld [vmem:[#allocation7 + $0xc4] ss:$8 sps:$4 sm:$0xff]  }
  0x56   :  { %v852_v36 = vld [vmem:[#allocation7 + $0xc0] ss:$8 sps:$4 sm:$0xff]   ;;  %v853_v37 = vld [vmem:[#allocation7 + $0xd4] ss:$8 sps:$4 sm:$0xff]   ;;  %v855_v38 = vld [vmem:[#allocation7 + $0xd0] ss:$8 sps:$4 sm:$0xff]  }
  0x57   :  { %396 = vmatpush1.bf16.msra.mxu1 %v822_v15  ;;  %v856_v39 = vld [vmem:[#allocation7 + $0xe4] ss:$8 sps:$4 sm:$0xff]   ;;  %v858_v40 = vld [vmem:[#allocation7 + $0xe0] ss:$8 sps:$4 sm:$0xff]   ;;  %v859_v41 = vld [vmem:[#allocation7 + $0xf4] ss:$8 sps:$4 sm:$0xff]  }
  0x58   :  { %150 = vmatpush1.bf16.msra.mxu0 %v813_v12  ;;  %397 = vmatprep.subr.bf16.mxu1 %v823_v17  ;;  %v861_v42 = vld [vmem:[#allocation7 + $0xf0] ss:$8 sps:$4 sm:$0xff]   ;;  %v862_v43 = vld [vmem:[#allocation8] ss:$8 sps:$4 sm:$0xff]   ;;  %v864_v44 = vld [vmem:[#allocation8 + $0x4] ss:$8 sps:$4 sm:$0xff]  }
  0x59   :  { %v867_v45 = vld [vmem:[#allocation8 + $0x14] ss:$8 sps:$4 sm:$0xff]   ;;  %639 = vmatprep.subr.bf16.mxu0 %v864_v44  ;;  %v865_v46 = vld [vmem:[#allocation8 + $0x10] ss:$8 sps:$4 sm:$0xff]   ;;  %v870_v47 = vld [vmem:[#allocation8 + $0x24] ss:$8 sps:$4 sm:$0xff]  }
  0x5a   :  { %v868_v48 = vld [vmem:[#allocation8 + $0x20] ss:$8 sps:$4 sm:$0xff]   ;;  %v873_v49 = vld [vmem:[#allocation8 + $0x34] ss:$8 sps:$4 sm:$0xff]   ;;  %v871_v50 = vld [vmem:[#allocation8 + $0x30] ss:$8 sps:$4 sm:$0xff]  }
  0x5b   :  { %728 = vmatmul.mubr.msk.bf16.vlgmr.msra.gmra.mrb[0].mxu0 %vm139_vm0, %v76_v16  ;;  %398 = vmatpush1.bf16.msra.mxu1 %v825_v18  ;;  %v876_v51 = vld [vmem:[#allocation8 + $0x44] ss:$8 sps:$4 sm:$0xff]   ;;  %v874_v52 = vld [vmem:[#allocation8 + $0x40] ss:$8 sps:$4 sm:$0xff]   ;;  %v879_v53 = vld [vmem:[#allocation8 + $0x54] ss:$8 sps:$4 sm:$0xff]  }
  0x5c   :  { %399 = vmatprep.subr.bf16.mxu1 %v826_v19  ;;  %640 = vmatpush1.bf16.msra.mxu0 %v862_v43  ;;  %v877_v54 = vld [vmem:[#allocation8 + $0x50] ss:$8 sps:$4 sm:$0xff]   ;;  %v882_v55 = vld [vmem:[#allocation8 + $0x64] ss:$8 sps:$4 sm:$0xff]   ;;  %v880_v56 = vld [vmem:[#allocation8 + $0x60] ss:$8 sps:$4 sm:$0xff]  }
  0x5d   :  { %641 = vmatprep.subr.bf16.mxu0 %v867_v45  ;;  %v885_v57 = vld [vmem:[#allocation8 + $0x74] ss:$8 sps:$4 sm:$0xff]   ;;  %v883_v58 = vld [vmem:[#allocation8 + $0x70] ss:$8 sps:$4 sm:$0xff]   ;;  %v888_v59 = vld [vmem:[#allocation8 + $0x84] ss:$8 sps:$4 sm:$0xff]  }
  0x5e   :  { %v886_v60 = vld [vmem:[#allocation8 + $0x80] ss:$8 sps:$4 sm:$0xff]   ;;  %v891_v61 = vld [vmem:[#allocation8 + $0x94] ss:$8 sps:$4 sm:$0xff]   ;;  %v889_v62 = vld [vmem:[#allocation8 + $0x90] ss:$8 sps:$4 sm:$0xff]  }
  0x5f   :  { %400 = vmatpush1.bf16.msra.mxu1 %v828_v20  ;;  %v894_v63 = vld [vmem:[#allocation8 + $0xa4] ss:$8 sps:$4 sm:$0xff]   ;;  %v892_v0 = vld [vmem:[#allocation8 + $0xa0] ss:$8 sps:$4 sm:$0xff]   ;;  %v897_v1 = vld [vmem:[#allocation8 + $0xb4] ss:$8 sps:$4 sm:$0xff]  }
  0x60   :  { %401 = vmatprep.subr.bf16.mxu1 %v829_v21  ;;  %642 = vmatpush1.bf16.msra.mxu0 %v865_v46  ;;  %v895_v2 = vld [vmem:[#allocation8 + $0xb0] ss:$8 sps:$4 sm:$0xff]   ;;  %v900_v3 = vld [vmem:[#allocation8 + $0xc4] ss:$8 sps:$4 sm:$0xff]   ;;  %v898_v4 = vld [vmem:[#allocation8 + $0xc0] ss:$8 sps:$4 sm:$0xff]  }
  0x61   :  { %643 = vmatprep.subr.bf16.mxu0 %v870_v47  ;;  %v903_v5 = vld [vmem:[#allocation8 + $0xd4] ss:$8 sps:$4 sm:$0xff]   ;;  %v901_v6 = vld [vmem:[#allocation8 + $0xd0] ss:$8 sps:$4 sm:$0xff]   ;;  %v130_v8 = vshrl.u32 %v129_v7, 7  ;;  %s1036_s20 = smov [#allocation10]  }
  0x62   :  { %v77_v10 = vld [vmem:[%s1149_s4] sm:$0x3]  ;;  %s709_s21 = sshll.u32 %s1036_s20, 4  ;;  %vm700_vm1 = vcmp.lt.s32.totalorder %v129_v7, 256  ;;  %s710_s21 = int_to_ptr.vmem [resolvable:$true] %s709_s21 }
  0x63   :  { %402 = vmatpush1.bf16.msra.mxu1 %v831_v22  ;;  %v131_v9 = vsub.s32 0, %v130_v8  ;;  %v135_v11 = vsub.s32 1, %v130_v8  ;;  %p1003_p5 = scmp.lt.s32.totalorder %s710_s21, %s710_s21 }
  0x64   :  { %403 = vmatprep.subr.bf16.mxu1 %v832_v23  ;;  %644 = vmatpush1.bf16.msra.mxu0 %v868_v48 }
  0x65   :  { %645 = vmatprep.subr.bf16.mxu0 %v873_v49  ;;  %v132_v12 = vrot.slane %v77_v10, %v131_v9  ;;  %v136_v13 = vrot.slane %v77_v10, %v135_v11 }
  0x67   :  { %404 = vmatpush1.bf16.msra.mxu1 %v834_v24  ;;  %v906_v24 = vld [vmem:[#allocation8 + $0xe4] ss:$8 sps:$4 sm:$0xff]  }
  0x68   :  { %405 = vmatprep.subr.bf16.mxu1 %v835_v25  ;;  %646 = vmatpush1.bf16.msra.mxu0 %v871_v50  ;;  %v904_v25 = vld [vmem:[#allocation8 + $0xe0] ss:$8 sps:$4 sm:$0xff]  }
  0x69   :  { %647 = vmatprep.subr.bf16.mxu0 %v876_v51 }
  0x6b   :  { %406 = vmatpush1.bf16.msra.mxu1 %v837_v26  ;;  %v909_v26 = vld [vmem:[#allocation8 + $0xf4] ss:$8 sps:$4 sm:$0xff]  }
  0x6c   :  { %407 = vmatprep.subr.bf16.mxu1 %v838_v27  ;;  %648 = vmatpush1.bf16.msra.mxu0 %v874_v52  ;;  %v907_v27 = vld [vmem:[#allocation8 + $0xf0] ss:$8 sps:$4 sm:$0xff]  }
  0x6d   :  { %649 = vmatprep.subr.bf16.mxu0 %v879_v53 }
  0x6f   :  { %408 = vmatpush1.bf16.msra.mxu1 %v840_v28  ;;  %v78_v28 = vld [vmem:[%s1149_s4 + $0x2] sm:$0x3] }
  0x70   :  { %409 = vmatprep.subr.bf16.mxu1 %v841_v29  ;;  %650 = vmatpush1.bf16.msra.mxu0 %v877_v54  ;;  %v384_v29 = vrot.slane %v78_v28, %v131_v9 }
  0x71   :  { %651 = vmatprep.subr.bf16.mxu0 %v882_v55 }
  0x73   :  { %410 = vmatpush1.bf16.msra.mxu1 %v843_v30  ;;  %v388_v30 = vrot.slane %v78_v28, %v135_v11 }
  0x74   :  { %411 = vmatprep.subr.bf16.mxu1 %v844_v31  ;;  %652 = vmatpush1.bf16.msra.mxu0 %v880_v56 }
  0x75   :  { %653 = vmatprep.subr.bf16.mxu0 %v885_v57 }
  0x77   :  { %412 = vmatpush1.bf16.msra.mxu1 %v846_v32 }
  0x78   :  { %413 = vmatprep.subr.bf16.mxu1 %v847_v33  ;;  %654 = vmatpush1.bf16.msra.mxu0 %v883_v58 }
  0x79   :  { %655 = vmatprep.subr.bf16.mxu0 %v888_v59 }
  0x7b   :  { %414 = vmatpush1.bf16.msra.mxu1 %v849_v34 }
  0x7c   :  { %415 = vmatprep.subr.bf16.mxu1 %v850_v35  ;;  %656 = vmatpush1.bf16.msra.mxu0 %v886_v60 }
  0x7d   :  { %657 = vmatprep.subr.bf16.mxu0 %v891_v61 }
  0x7f   :  { %416 = vmatpush1.bf16.msra.mxu1 %v852_v36 }
  0x80   :  { %417 = vmatprep.subr.bf16.mxu1 %v853_v37  ;;  %658 = vmatpush1.bf16.msra.mxu0 %v889_v62 }
  0x81   :  { %659 = vmatprep.subr.bf16.mxu0 %v894_v63 }
  0x83   :  { %418 = vmatpush1.bf16.msra.mxu1 %v855_v38 }
  0x84   :  { %419 = vmatprep.subr.bf16.mxu1 %v856_v39  ;;  %660 = vmatpush1.bf16.msra.mxu0 %v892_v0 }
  0x85   :  { %661 = vmatprep.subr.bf16.mxu0 %v897_v1 }
  0x87   :  { %420 = vmatpush1.bf16.msra.mxu1 %v858_v40 }
  0x88   :  { %421 = vmatprep.subr.bf16.mxu1 %v859_v41  ;;  %662 = vmatpush1.bf16.msra.mxu0 %v895_v2  ;;  %v79_v41 = vld [vmem:[%s1149_s4 + $0x4] sm:$0x3]  ;;  %s998_s4 = scalar_lea.vmem %s710_s21, 32 }
  0x89   :  { %663 = vmatprep.subr.bf16.mxu0 %v900_v3  ;;  %v632_v44 = vrot.slane %v79_v41, %v131_v9  ;;  %v636_v45 = vrot.slane %v79_v41, %v135_v11  ;;  %p999_p4 = scmp.ne.s32.totalorder %s710_s21, %s998_s4  ;;  %p1004_p6 = scmp.lt.s32.totalorder %s998_s4, %s998_s4 }
  0x8b   :  { %422 = vmatpush1.bf16.msra.mxu1 %v861_v42  ;;  %v1035_v42 = vmov 1966171168   ;;  %p1005_p7 = por %p1004_p6, %p1003_p5 }
  0x8c   :  { %664 = vmatpush1.bf16.msra.mxu0 %v898_v4  ;;  %v684_v43 = vunpack.c.l.s4 %v1035_v42 }
  0x8d   :  { %665 = vmatprep.subr.bf16.mxu0 %v903_v5  ;;  %p1006_p8 = pnand %p1005_p7, %p999_p4 }
  0x8e   :  { %v685_v46 = vunpack.c.0.s8 %v684_v43 }
  0x90   :  { %666 = vmatpush1.bf16.msra.mxu0 %v901_v6  ;;  %v688_v51 = vsub.s32 %v685_v46, %v130_v8 }
  0x91   :  { %667 = vmatprep.subr.bf16.mxu0 %v906_v24 }
  0x94   :  { %668 = vmatpush1.bf16.msra.mxu0 %v904_v25 }
  0x95   :  { %669 = vmatprep.subr.bf16.mxu0 %v909_v26 }
  0x98   :  { %670 = vmatpush1.bf16.msra.mxu0 %v907_v27 }
 0x12e   :  { %v177_v14 = vpop.f32.mrb[0].mxu0 }
 0x12f   :  { %v178_v15 = vadd.f32 %v177_v14, %v132_v12  ;;  %v179_v16 = vpop.f32.mrb[1].mxu0 }
 0x130   :  { %v180_v17 = vadd.f32 %v179_v16, %v136_v13  ;;  %v181_v18 = vpop.f32.mrb[2].mxu0 }
 0x131   :  { %v184_v19 = vmax.f32 %v178_v15, 0.0  ;;  %v182_v20 = vpop.f32.mrb[3].mxu0 }
 0x132   :  { %v185_v21 = vmax.f32 %v180_v17, 0.0 }
 0x133   :  { %v186_v23 = vpack.c.bf16 %v184_v19, %v184_v19 }
 0x134   :  { %v187_v22 = vpack.c.bf16 %v185_v21, %v185_v21 }
 0x136   :  { %423 = vmatprep.mubr.bf16.mxu1 %v187_v22 }
 0x137   :  { %424 = vmatmul.mubr.bf16.vlgmr.msra.gmra.mrb[0].mxu1 %v186_v23 }
 0x20a   :  { %v425_v31 = vpop.f32.mrb[0].mxu1 }
 0x20b   :  { %v426_v32 = vadd.f32 %v425_v31, %v384_v29  ;;  %v427_v33 = vpop.f32.mrb[1].mxu1 }
 0x20c   :  { %v428_v34 = vadd.f32 %v427_v33, %v388_v30  ;;  %v429_v35 = vpop.f32.mrb[2].mxu1 }
 0x20d   :  { %v432_v36 = vmax.f32 %v426_v32, 0.0  ;;  %v430_v37 = vpop.f32.mrb[3].mxu1 }
 0x20e   :  { %v433_v38 = vmax.f32 %v428_v34, 0.0 }
 0x20f   :  { %v434_v40 = vpack.c.bf16 %v432_v36, %v432_v36 }
 0x210   :  { %v435_v39 = vpack.c.bf16 %v433_v38, %v433_v38 }
 0x212   :  { %671 = vmatprep.mubr.bf16.mxu0 %v435_v39 }
 0x213   :  { %672 = vmatmul.mubr.bf16.vlgmr.msra.gmra.mrb[4].mxu0 %v434_v40 }
 0x2e6   :  { %v673_v47 = vpop.f32.mrb[4].mxu0 }
 0x2e7   :  { %v674_v48 = vadd.f32 %v673_v47, %v632_v44  ;;  %v675_v49 = vpop.f32.mrb[5].mxu0 }
 0x2e8   :  { %v676_v50 = vadd.f32 %v675_v49, %v636_v45  ;;  %v677_v52 = vpop.f32.mrb[6].mxu0 }
 0x2e9   :  { %v678_v53 = vpop.f32.mrb[7].mxu0 }
 0x2ea   :  { %v682_v54 = vcombine.low %v674_v48, %v676_v50 }
 0x2ec   :  { %v689_v55 = vrot.slane %v682_v54, %v688_v51 }
 0x2ee   :  { %v696_v56 = vrot.slane %v689_v55, %v688_v51 }
 0x2f0   :  { %702 = vst.msk [vmem:[#allocation10] sm:$0x3] %vm700_vm1, %v696_v56 }
 0x2f1   :  { %1009 = shalt.err (!%p1006_p8)
}
 0x2f2   :  { %s1010_s24 = scalar_lea.hbm %s1150_s5, 32 }
 0x2f3   :  { %p1011_p9 = scmp.ne.s32.totalorder %s1150_s5, %s1010_s24  ;;  %p1014_p10 = scmp.lt.u32.totalorder %s1010_s24, %s1150_s5 }
 0x2f5   :  { %p1016_p11 = pnand %p1014_p10, %p1011_p9 }
 0x2f7   :  { %1019 = shalt.err (!%p1016_p11)
}
 0x2f8   :  { %712 = dma.vmem_to_hbm [thread:$0]  %s710_s21, 32, %s1150_s5, [#allocation4]  }
 0x2f9   :  { %1026 = dma.done.wait [#allocation4], 32  }
 0x2fa   :  { %1027 = vsyncadd [#allocation4], 4294967264 }
 0x2fb   :  { %716 = vsyncpa [#allocation3], 1 }
 0x2fc   :  { %717 = vsyncpa [#allocation6], 1 }
 0x2fd   :  { %718 = vsyncpa [#allocation9], 1 }
 0x2fe   :  { %719 = vsyncpa [#allocation4], 1 }

</bundles_post_ra>
